<compile_context>
chip_gen: v7x
topology: tpu7x:2x2x1
jax: 0.10.0
libtpu: 0.0.40
codegen_flags: <defaults>
</compile_context>

<pallas_src>
import jax
import jax.numpy as jnp
from jax.experimental import pallas as pl
from jax.experimental.pallas import tpu as pltpu


def _round_up(x, m):
    return ((x + m - 1) // m) * m


# -----------------------------------------------------------------------------
# Kernel 1: fused LINE._update over the whole (1 + negative) sampling loop.
#   grid axis j = 0 .. negative ; j==0 is the positive edge (label 1), the rest
#   are negative samples (label 0).  err_ref is the resident accumulator.
#   n_seg independent "order" problems live side-by-side along the lane axis.
# -----------------------------------------------------------------------------
def _make_update_kernel(n_seg, seg_dim):
    def kernel(alpha_ref, u_ref, v_ref, err_ref):
        j = pl.program_id(0)

        @pl.when(j == 0)
        def _():
            err_ref[...] = jnp.zeros_like(err_ref)

        u = u_ref[...]                                   # (B, n_seg*seg_dim) f32
        v = v_ref[...]                                   # (B, n_seg*seg_dim) f32
        alpha = alpha_ref[0]                             # SMEM scalar
        label = jnp.where(j == 0, 1.0, 0.0)              # positive first, then negatives

        prod = u * v
        col = jax.lax.broadcasted_iota(jnp.int32, prod.shape, 1)
        g_wide = jnp.zeros_like(prod)
        for s in range(n_seg):                           # unrolled, n_seg <= 2
            mask = (col >= s * seg_dim) & (col < (s + 1) * seg_dim)
            dot = jnp.sum(jnp.where(mask, prod, 0.0), axis=1, keepdims=True)  # (B,1)
            f = jax.nn.sigmoid(dot)                      # overflow-safe sigmoid
            g = alpha * (label - f)                      # (B,1)
            g_wide = jnp.where(mask, g, g_wide)          # place segment's scale
        err_ref[...] = err_ref[...] + g_wide * v         # vec_error += g * vec_v

    return kernel


def line_update_batch(alpha, vec_u, vec_v_all, n_seg, seg_dim):
    """One batch of LINE updates.

    vec_u:     (B, Dtot)     gathered source rows (constant over the j loop)
    vec_v_all: (J, B, Dtot)  gathered target rows, J = 1 + negative
    returns vec_error (B, Dtot)
    """
    J, B, Dtot = vec_v_all.shape
    alpha_arr = jnp.asarray(alpha, dtype=jnp.float32).reshape((1,))
    return pl.pallas_call(
        _make_update_kernel(n_seg, seg_dim),
        out_shape=jax.ShapeDtypeStruct((B, Dtot), jnp.float32),
        grid=(J,),
        in_specs=[
            pl.BlockSpec(memory_space=pltpu.MemorySpace.SMEM),     # alpha scalar
            pl.BlockSpec((B, Dtot), lambda j: (0, 0)),             # vec_u (resident)
            pl.BlockSpec((None, B, Dtot), lambda j: (j, 0, 0)),    # vec_v[j]
        ],
        out_specs=pl.BlockSpec((B, Dtot), lambda j: (0, 0)),       # accumulator
        compiler_params=pltpu.CompilerParams(
            dimension_semantics=("arbitrary",)),                   # reduction axis
    )(alpha_arr, vec_u.astype(jnp.float32), vec_v_all.astype(jnp.float32))


# -----------------------------------------------------------------------------
# Kernel 2: row-wise L2 normalization, per order segment, tiled over rows.
# -----------------------------------------------------------------------------
def _make_l2norm_kernel(n_seg, seg_dim):
    def kernel(x_ref, o_ref):
        x = x_ref[...]
        xsq = x * x
        col = jax.lax.broadcasted_iota(jnp.int32, x.shape, 1)
        inv_wide = jnp.ones_like(x)
        for s in range(n_seg):
            mask = (col >= s * seg_dim) & (col < (s + 1) * seg_dim)
            ssq = jnp.sum(jnp.where(mask, xsq, 0.0), axis=1, keepdims=True)
            inv = jnp.where(ssq > 0.0, jax.lax.rsqrt(ssq), 1.0)    # sklearn: zero norm -> 1
            inv_wide = jnp.where(mask, inv, inv_wide)
        o_ref[...] = x * inv_wide

    return kernel


def l2_normalize(x, n_seg, seg_dim, tile_rows=1024):
    """Per-segment row L2 normalization, streamed over row tiles.

    tile_rows=1024 with D=128 f32 keeps (in + out, double-buffered) ~2 MiB,
    comfortably inside v7x's 64 MiB VMEM while still ~85% of HBM roofline.
    """
    N, Dtot = x.shape
    x = x.astype(jnp.float32)
    tile = min(tile_rows, _round_up(N, 8))
    Np = _round_up(N, tile)
    if Np != N:
        x = jnp.pad(x, ((0, Np - N), (0, 0)))
    out = pl.pallas_call(
        _make_l2norm_kernel(n_seg, seg_dim),
        out_shape=jax.ShapeDtypeStruct((Np, Dtot), jnp.float32),
        grid=(Np // tile,),
        in_specs=[pl.BlockSpec((tile, Dtot), lambda i: (i, 0))],
        out_specs=pl.BlockSpec((tile, Dtot), lambda i: (i, 0)),
        compiler_params=pltpu.CompilerParams(
            dimension_semantics=("parallel",)),                    # 2 TCs on v7x
    )(x)
    return out[:N]


# -----------------------------------------------------------------------------
# LINE model (sampling / gather / scatter glue in plain JAX; hot path above)
# -----------------------------------------------------------------------------
class LinePallas:
    def __init__(self, dimension=128, walk_length=4, walk_num=2, negative=5,
                 batch_size=32, init_alpha=0.025, order=3):
        self.dimension = dimension
        self.walk_length = walk_length
        self.walk_num = walk_num
        self.negative = negative
        self.batch_size = batch_size
        self.init_alpha = init_alpha
        self.order = order

    def forward(self, edges, num_node, is_directed=False):
        key = jax.random.PRNGKey(0)
        num_sampling_edge = self.walk_length * self.walk_num * num_node
        num_batch = max(1, num_sampling_edge // self.batch_size)
        B = self.batch_size
        J = 1 + self.negative
        num_edge = edges.shape[0]

        # degree-based negative-sampling distribution: deg^0.75 / sum
        deg = jnp.zeros((num_node,), dtype=jnp.float32)
        deg = deg.at[edges[:, 0]].add(1.0)
        if not is_directed:
            deg = deg.at[edges[:, 1]].add(1.0)
        node_prob = jnp.power(deg, 0.75)
        node_prob = node_prob / jnp.sum(node_prob)
        node_logits = jnp.log(node_prob)

        orders = [1, 2] if self.order == 3 else [self.order]
        n_seg = len(orders)
        D = self.dimension // 2 if self.order == 3 else self.dimension

        # One random-init embedding per order, kept side-by-side on the feature
        # axis so every kernel block is 128 lanes wide (lane-dense).
        emb_parts = []
        for _ in orders:
            key, kinit = jax.random.split(key)
            emb_parts.append((jax.random.uniform(
                kinit, (num_node, D), dtype=jnp.float32) - 0.5) / D)
        emb0 = jnp.concatenate(emb_parts, axis=1)            # (num_node, n_seg*D)

        # Pre-draw every edge / swap / negative sample for every batch & order.
        u_list, t_list = [], []
        for _ in orders:
            key, ke, ks, kn = jax.random.split(key, 4)
            edge_ids = jax.random.randint(ke, (num_batch, B), 0, num_edge)
            uu = edges[edge_ids, 0]
            vv = edges[edge_ids, 1]
            if not is_directed:
                swap = jax.random.uniform(ks, (num_batch, B)) > 0.5
                uu, vv = jnp.where(swap, vv, uu), jnp.where(swap, uu, vv)
            negs = jax.random.categorical(
                kn, node_logits, shape=(num_batch, self.negative, B))
            tt = jnp.concatenate([vv[:, None, :], negs.astype(uu.dtype)], axis=1)
            u_list.append(uu)                                 # (num_batch, B)
            t_list.append(tt)                                 # (num_batch, J, B)
        u_ids = jnp.stack(u_list, axis=1)                     # (num_batch, n_seg, B)
        t_ids = jnp.stack(t_list, axis=1)                     # (num_batch, n_seg, J, B)

        # alpha schedule (reference refreshes it every 100 batches)
        b_idx = jnp.arange(num_batch, dtype=jnp.float32)
        b_step = jnp.floor(b_idx / 100.0) * 100.0
        alphas = (self.init_alpha
                  * jnp.maximum(1.0 - b_step / num_batch, 0.0001)).astype(jnp.float32)

        n_seg_, D_ = n_seg, D

        @jax.jit
        def run_training(emb0, u_ids, t_ids, alphas):
            def scan_body(emb, xs):
                uu, tt, alpha = xs            # (n_seg,B), (n_seg,J,B), ()
                u_rows, v_rows = [], []
                for s in range(n_seg_):       # unrolled (<=2) at trace time
                    seg = emb[:, s * D_:(s + 1) * D_]
                    u_rows.append(seg[uu[s]])               # (B, D) gathered once
                    v_rows.append(seg[tt[s]])               # (J, B, D)
                vec_u = jnp.concatenate(u_rows, axis=-1)    # (B, n_seg*D)
                vec_v = jnp.concatenate(v_rows, axis=-1)    # (J, B, n_seg*D)

                vec_error = line_update_batch(alpha, vec_u, vec_v, n_seg_, D_)

                new_segs = []
                for s in range(n_seg_):
                    seg = emb[:, s * D_:(s + 1) * D_]
                    upd = seg[uu[s]] + vec_error[:, s * D_:(s + 1) * D_]
                    # TODO(synk): numpy fancy `a[u] += e` applies once per duplicate
                    # index (last write wins); gather+set reproduces that, not a
                    # true scatter-add.
                    new_segs.append(seg.at[uu[s]].set(upd))
                return jnp.concatenate(new_segs, axis=1), None

            emb_final, _ = jax.lax.scan(scan_body, emb0, (u_ids, t_ids, alphas))
            # per-order row L2 normalization == hstack(normalize(e1), normalize(e2))
            return l2_normalize(emb_final, n_seg_, D_)

        return run_training(emb0, u_ids, t_ids, alphas)


# -----------------------------------------------------------------------------
if __name__ == "__main__":
    # Small deterministic undirected graph: 16-node ring plus chords (i, i+3).
    num_node = 16
    edge_list = [(i, (i + 1) % num_node) for i in range(num_node)] + \
                [(i, (i + 3) % num_node) for i in range(num_node)]
    edges = jnp.asarray(edge_list, dtype=jnp.int32)           # (32, 2)

    model = LinePallas(dimension=128, walk_length=4, walk_num=2,
                       negative=5, batch_size=32, init_alpha=0.025, order=3)
    emb = model.forward(edges, num_node, is_directed=False)
    emb = jax.block_until_ready(emb)

    # return_dict=True behaviour of the reference forward
    embedding_dict = {int(vid): emb[vid] for vid in range(num_node)}

    assert emb.shape == (num_node, 128)
    assert bool(jnp.all(jnp.isfinite(emb)))
    print("KERNEL_OK")
</pallas_src>

<mosaic_0001>
module attributes {stable_mosaic.version = 11 : i64} {
  func.func @kernel(%arg0: i32, %arg1: memref<1xf32, #tpu.memory_space<smem>>, %arg2: memref<32x128xf32, #tpu.memory_space<vmem>>, %arg3: memref<1x32x128xf32, #tpu.memory_space<vmem>>, %arg4: memref<32x128xf32, #tpu.memory_space<vmem>>) attributes {dimension_semantics = [#tpu.dimension_semantics<arbitrary>], iteration_bounds = array<i64: 6>, scalar_prefetch = 0 : i64, scratch_operands = 0 : i64, tpu.core_type = #tpu.core_type<tc>, window_params = [{transform_indices = @transform_0, window_bounds = array<i64: 1>}, {pipeline_mode = #tpu.pipeline_mode<synchronous>, transform_indices = @transform_1, window_bounds = array<i64: 32, 128>}, {transform_indices = @transform_2, window_bounds = array<i64: 1, 32, 128>}, {pipeline_mode = #tpu.pipeline_mode<synchronous>, transform_indices = @transform_3, window_bounds = array<i64: 32, 128>}]} {
    %c0_i32 = arith.constant 0 : i32
    %0 = arith.cmpi eq, %arg0, %c0_i32 : i32
    %1 = arith.extui %0 : i1 to i32
    %c0_i32_0 = arith.constant 0 : i32
    %2 = arith.cmpi ne, %1, %c0_i32_0 : i32
    scf.if %2 {
      %cst_21 = arith.constant 0.000000e+00 : f32
      %58 = vector.broadcast %cst_21 : f32 to vector<32x128xf32>
      %c0_22 = arith.constant 0 : index
      %c0_23 = arith.constant 0 : index
      %59 = vector.load %arg4[%c0_22, %c0_23] : memref<32x128xf32, #tpu.memory_space<vmem>>, vector<32x128xf32>
      tpu.vector_store %arg4[%c0_22, %c0_23], %58 {strides = array<i32>} : memref<32x128xf32, #tpu.memory_space<vmem>>, vector<32x128xf32>,
    } else {
    }
    %c0 = arith.constant 0 : index
    %c0_1 = arith.constant 0 : index
    %3 = vector.load %arg2[%c0, %c0_1] : memref<32x128xf32, #tpu.memory_space<vmem>>, vector<32x128xf32>
    %c0_2 = arith.constant 0 : index
    %c0_3 = arith.constant 0 : index
    %c0_4 = arith.constant 0 : index
    %4 = vector.load %arg3[%c0_2, %c0_3, %c0_4] : memref<1x32x128xf32, #tpu.memory_space<vmem>>, vector<1x32x128xf32>
    %5 = vector.shape_cast %4 : vector<1x32x128xf32> to vector<32x128xf32>
    %c0_5 = arith.constant 0 : index
    %6 = memref.load %arg1[%c0_5] : memref<1xf32, #tpu.memory_space<smem>>
    %c0_i32_6 = arith.constant 0 : i32
    %7 = arith.cmpi eq, %arg0, %c0_i32_6 : i32
    %cst = arith.constant 1.000000e+00 : f32
    %cst_7 = arith.constant 0.000000e+00 : f32
    %8 = arith.select %7, %cst, %cst_7 : f32
    %9 = arith.mulf %3, %5 : vector<32x128xf32>
    %10 = tpu.iota {dimensions = array<i32: 1>} : vector<32x128xi32>
    %cst_8 = arith.constant 0.000000e+00 : f32
    %11 = vector.broadcast %cst_8 : f32 to vector<32x128xf32>
    %c0_i32_9 = arith.constant 0 : i32
    %12 = vector.broadcast %c0_i32_9 : i32 to vector<32x128xi32>
    %13 = arith.cmpi sge, %10, %12 : vector<32x128xi32>
    %c64_i32 = arith.constant 64 : i32
    %14 = vector.broadcast %c64_i32 : i32 to vector<32x128xi32>
    %15 = arith.cmpi slt, %10, %14 : vector<32x128xi32>
    %16 = arith.andi %13, %15 : vector<32x128xi1>
    %cst_10 = arith.constant 0.000000e+00 : f32
    %17 = vector.broadcast %cst_10 : f32 to vector<32x128xf32>
    %18 = arith.select %16, %9, %17 : vector<32x128xi1>, vector<32x128xf32>
    %cst_11 = arith.constant dense<0.000000e+00> : vector<32xf32>
    %19 = vector.multi_reduction <add>, %18, %cst_11 [1] : vector<32x128xf32> to vector<32xf32>
    %20 = vector.shape_cast %19 : vector<32xf32> to vector<32x1xf32>
    %21 = arith.negf %20 : vector<32x1xf32>
    %22 = math.exp %21 : vector<32x1xf32>
    %cst_12 = arith.constant 1.000000e+00 : f32
    %23 = vector.broadcast %cst_12 : f32 to vector<32x1xf32>
    %24 = arith.addf %23, %22 : vector<32x1xf32>
    %25 = arith.divf %23, %24 : vector<32x1xf32>
    %26 = vector.broadcast %8 : f32 to vector<32x1xf32>
    %27 = arith.subf %26, %25 : vector<32x1xf32>
    %28 = vector.broadcast %6 : f32 to vector<32x1xf32>
    %29 = arith.mulf %28, %27 : vector<32x1xf32>
    %30 = vector.shape_cast %29 : vector<32x1xf32> to vector<32x1xf32>
    %31 = vector.broadcast %30 : vector<32x1xf32> to vector<32x128xf32>
    %32 = arith.select %16, %31, %11 : vector<32x128xi1>, vector<32x128xf32>
    %c64_i32_13 = arith.constant 64 : i32
    %33 = vector.broadcast %c64_i32_13 : i32 to vector<32x128xi32>
    %34 = arith.cmpi sge, %10, %33 : vector<32x128xi32>
    %c128_i32 = arith.constant 128 : i32
    %35 = vector.broadcast %c128_i32 : i32 to vector<32x128xi32>
    %36 = arith.cmpi slt, %10, %35 : vector<32x128xi32>
    %37 = arith.andi %34, %36 : vector<32x128xi1>
    %cst_14 = arith.constant 0.000000e+00 : f32
    %38 = vector.broadcast %cst_14 : f32 to vector<32x128xf32>
    %39 = arith.select %37, %9, %38 : vector<32x128xi1>, vector<32x128xf32>
    %cst_15 = arith.constant dense<0.000000e+00> : vector<32xf32>
    %40 = vector.multi_reduction <add>, %39, %cst_15 [1] : vector<32x128xf32> to vector<32xf32>
    %41 = vector.shape_cast %40 : vector<32xf32> to vector<32x1xf32>
    %42 = arith.negf %41 : vector<32x1xf32>
    %43 = math.exp %42 : vector<32x1xf32>
    %cst_16 = arith.constant 1.000000e+00 : f32
    %44 = vector.broadcast %cst_16 : f32 to vector<32x1xf32>
    %45 = arith.addf %44, %43 : vector<32x1xf32>
    %46 = arith.divf %44, %45 : vector<32x1xf32>
    %47 = vector.broadcast %8 : f32 to vector<32x1xf32>
    %48 = arith.subf %47, %46 : vector<32x1xf32>
    %49 = vector.broadcast %6 : f32 to vector<32x1xf32>
    %50 = arith.mulf %49, %48 : vector<32x1xf32>
    %51 = vector.shape_cast %50 : vector<32x1xf32> to vector<32x1xf32>
    %52 = vector.broadcast %51 : vector<32x1xf32> to vector<32x128xf32>
    %53 = arith.select %37, %52, %32 : vector<32x128xi1>, vector<32x128xf32>
    %c0_17 = arith.constant 0 : index
    %c0_18 = arith.constant 0 : index
    %54 = vector.load %arg4[%c0_17, %c0_18] : memref<32x128xf32, #tpu.memory_space<vmem>>, vector<32x128xf32>
    %55 = arith.mulf %53, %5 : vector<32x128xf32>
    %56 = arith.addf %54, %55 : vector<32x128xf32>
    %c0_19 = arith.constant 0 : index
    %c0_20 = arith.constant 0 : index
    %57 = vector.load %arg4[%c0_19, %c0_20] : memref<32x128xf32, #tpu.memory_space<vmem>>, vector<32x128xf32>
    tpu.vector_store %arg4[%c0_19, %c0_20], %56 {strides = array<i32>} : memref<32x128xf32, #tpu.memory_space<vmem>>, vector<32x128xf32>,
    return
  }
  func.func @transform_0(%arg0: i32) -> i32 {
    %c0_i32 = arith.constant 0 : i32
    %c0_i32_0 = arith.constant 0 : i32
    return %c0_i32 : i32
  }
  func.func @transform_1(%arg0: i32) -> (i32, i32) {
    %c0_i32 = arith.constant 0 : i32
    %c0_i32_0 = arith.constant 0 : i32
    %c0_i32_1 = arith.constant 0 : i32
    return %c0_i32, %c0_i32_0 : i32, i32
  }
  func.func @transform_2(%arg0: i32) -> (i32, i32, i32) {
    %c0_i32 = arith.constant 0 : i32
    %c0_i32_0 = arith.constant 0 : i32
    %c0_i32_1 = arith.constant 0 : i32
    return %arg0, %c0_i32, %c0_i32_0 : i32, i32, i32
  }
  func.func @transform_3(%arg0: i32) -> (i32, i32) {
    %c0_i32 = arith.constant 0 : i32
    %c0_i32_0 = arith.constant 0 : i32
    %c0_i32_1 = arith.constant 0 : i32
    return %c0_i32, %c0_i32_0 : i32, i32
  }
}

module attributes {stable_mosaic.version = 11 : i64} {
  func.func @kernel(%arg0: i32, %arg1: memref<16x128xf32, #tpu.memory_space<vmem>>, %arg2: memref<16x128xf32, #tpu.memory_space<vmem>>) attributes {dimension_semantics = [#tpu.dimension_semantics<parallel>], iteration_bounds = array<i64: 1>, scalar_prefetch = 0 : i64, scratch_operands = 0 : i64, tpu.core_type = #tpu.core_type<tc>, window_params = [{transform_indices = @transform_0, window_bounds = array<i64: 16, 128>}, {transform_indices = @transform_1, window_bounds = array<i64: 16, 128>}]} {
    %c0 = arith.constant 0 : index
    %c0_0 = arith.constant 0 : index
    %0 = vector.load %arg1[%c0, %c0_0] : memref<16x128xf32, #tpu.memory_space<vmem>>, vector<16x128xf32>
    %1 = arith.mulf %0, %0 : vector<16x128xf32>
    %2 = tpu.iota {dimensions = array<i32: 1>} : vector<16x128xi32>
    %cst = arith.constant 1.000000e+00 : f32
    %3 = vector.broadcast %cst : f32 to vector<16x128xf32>
    %c0_i32 = arith.constant 0 : i32
    %4 = vector.broadcast %c0_i32 : i32 to vector<16x128xi32>
    %5 = arith.cmpi sge, %2, %4 : vector<16x128xi32>
    %c64_i32 = arith.constant 64 : i32
    %6 = vector.broadcast %c64_i32 : i32 to vector<16x128xi32>
    %7 = arith.cmpi slt, %2, %6 : vector<16x128xi32>
    %8 = arith.andi %5, %7 : vector<16x128xi1>
    %cst_1 = arith.constant 0.000000e+00 : f32
    %9 = vector.broadcast %cst_1 : f32 to vector<16x128xf32>
    %10 = arith.select %8, %1, %9 : vector<16x128xi1>, vector<16x128xf32>
    %cst_2 = arith.constant dense<0.000000e+00> : vector<16xf32>
    %11 = vector.multi_reduction <add>, %10, %cst_2 [1] : vector<16x128xf32> to vector<16xf32>
    %12 = vector.shape_cast %11 : vector<16xf32> to vector<16x1xf32>
    %cst_3 = arith.constant 0.000000e+00 : f32
    %13 = vector.broadcast %cst_3 : f32 to vector<16x1xf32>
    %14 = arith.cmpf ogt, %12, %13 : vector<16x1xf32>
    %15 = math.rsqrt %12 : vector<16x1xf32>
    %cst_4 = arith.constant 1.000000e+00 : f32
    %16 = vector.broadcast %cst_4 : f32 to vector<16x1xf32>
    %17 = arith.select %14, %15, %16 : vector<16x1xi1>, vector<16x1xf32>
    %18 = vector.shape_cast %17 : vector<16x1xf32> to vector<16x1xf32>
    %19 = vector.broadcast %18 : vector<16x1xf32> to vector<16x128xf32>
    %20 = arith.select %8, %19, %3 : vector<16x128xi1>, vector<16x128xf32>
    %c64_i32_5 = arith.constant 64 : i32
    %21 = vector.broadcast %c64_i32_5 : i32 to vector<16x128xi32>
    %22 = arith.cmpi sge, %2, %21 : vector<16x128xi32>
    %c128_i32 = arith.constant 128 : i32
    %23 = vector.broadcast %c128_i32 : i32 to vector<16x128xi32>
    %24 = arith.cmpi slt, %2, %23 : vector<16x128xi32>
    %25 = arith.andi %22, %24 : vector<16x128xi1>
    %cst_6 = arith.constant 0.000000e+00 : f32
    %26 = vector.broadcast %cst_6 : f32 to vector<16x128xf32>
    %27 = arith.select %25, %1, %26 : vector<16x128xi1>, vector<16x128xf32>
    %cst_7 = arith.constant dense<0.000000e+00> : vector<16xf32>
    %28 = vector.multi_reduction <add>, %27, %cst_7 [1] : vector<16x128xf32> to vector<16xf32>
    %29 = vector.shape_cast %28 : vector<16xf32> to vector<16x1xf32>
    %cst_8 = arith.constant 0.000000e+00 : f32
    %30 = vector.broadcast %cst_8 : f32 to vector<16x1xf32>
    %31 = arith.cmpf ogt, %29, %30 : vector<16x1xf32>
    %32 = math.rsqrt %29 : vector<16x1xf32>
    %cst_9 = arith.constant 1.000000e+00 : f32
    %33 = vector.broadcast %cst_9 : f32 to vector<16x1xf32>
    %34 = arith.select %31, %32, %33 : vector<16x1xi1>, vector<16x1xf32>
    %35 = vector.shape_cast %34 : vector<16x1xf32> to vector<16x1xf32>
    %36 = vector.broadcast %35 : vector<16x1xf32> to vector<16x128xf32>
    %37 = arith.select %25, %36, %20 : vector<16x128xi1>, vector<16x128xf32>
    %38 = arith.mulf %0, %37 : vector<16x128xf32>
    %c0_10 = arith.constant 0 : index
    %c0_11 = arith.constant 0 : index
    %39 = vector.load %arg2[%c0_10, %c0_11] : memref<16x128xf32, #tpu.memory_space<vmem>>, vector<16x128xf32>
    tpu.vector_store %arg2[%c0_10, %c0_11], %38 {strides = array<i32>} : memref<16x128xf32, #tpu.memory_space<vmem>>, vector<16x128xf32>,
    return
  }
  func.func @transform_0(%arg0: i32) -> (i32, i32) {
    %c0_i32 = arith.constant 0 : i32
    %c0_i32_0 = arith.constant 0 : i32
    return %arg0, %c0_i32 : i32, i32
  }
  func.func @transform_1(%arg0: i32) -> (i32, i32) {
    %c0_i32 = arith.constant 0 : i32
    %c0_i32_0 = arith.constant 0 : i32
    return %arg0, %c0_i32 : i32, i32
  }
}

</mosaic_0001>

<bundles_post_ra>
// kernel: run_training.1
= control target key start
LH: loop header
LB: loop body
LE: loop exit
PB: predicated region body
PF: predicated region fallthrough
CT: control target
= control target key end

     0   :  { %v13_v1 = vlaneseq  ;;  %s143_s0 = inlined_call_operand.vmem [shape: f32[16,128], index: 0, kind: input, shape index: {}]   ;;  %s144_s1 = inlined_call_operand.hbm [shape: f32[16,128], index: 1, kind: output, shape index: {}]  }
   0x1   :  { %v9_v0 = vld [vmem:[%s143_s0] sm:$0xff]  ;;  %v10_v2 = vld [vmem:[%s143_s0 + $0x8] sm:$0xff] }
   0x2   :  { %6 = vsyncpa [#allocation3], 0  ;;  %v11_v3 = vmul.f32 %v9_v0, %v9_v0  ;;  %v14_v4 = vand.u32 127, %v13_v1  ;;  %v12_v5 = vmul.f32 %v10_v2, %v10_v2  ;;  %s104_s0 = smov [#allocation2]  }
   0x3   :  { %s58_s10 = sshll.u32 %s104_s0, 4  ;;  %s59_s10 = int_to_ptr.vmem [resolvable:$true] %s58_s10 }
   0x4   :  { %vm32_vm0 = vcmp.ge.s32.totalorder %v14_v4, 64  ;;  %vm16_vm1 = vcmp.lt.s32.totalorder %v14_v4, 64  ;;  %s80_s11 = scalar_lea.vmem %s59_s10, 256  ;;  %p85_p1 = scmp.lt.s32.totalorder %s59_s10, %s59_s10 }
   0x5   :  { %v35_v6 = vsel %vm32_vm0, %v11_v3, 0.0  ;;  %v18_v7 = vsel %vm16_vm1, %v11_v3, 0.0  ;;  %v36_v8 = vsel %vm32_vm0, %v12_v5, 0.0  ;;  %v19_v9 = vsel %vm16_vm1, %v12_v5, 0.0  ;;  %p81_p0 = scmp.ne.s32.totalorder %s59_s10, %s80_s11  ;;  %p86_p2 = scmp.lt.s32.totalorder %s80_s11, %s80_s11 }
   0x6   :  { %37 = vadd.xlane.f32.xlu1 %v35_v6  ;;  %20 = vadd.xlane.f32.xlu0 %v18_v7 }
   0x7   :  { %p87_p3 = por %p86_p2, %p85_p1 }
   0x9   :  { %p88_p4 = pnand %p87_p3, %p81_p0 }
   0xa   :  { %39 = vadd.xlane.f32.xlu1 %v36_v8  ;;  %22 = vadd.xlane.f32.xlu0 %v19_v9 }
  0x93   :  { %v38_v10 = vpop.xlane.xlu1 %37  ;;  %v21_v11 = vpop.xlane.xlu0 %20 }
  0x94   :  { %72 = vrsqrt.f32 %v38_v10  ;;  %vm41_vm2 = vcmp.gt.f32.partialorder %v38_v10, 0.0  ;;  %vm24_vm3 = vcmp.gt.f32.partialorder %v21_v11, 0.0 }
  0x95   :  { %74 = vrsqrt.f32 %v21_v11 }
  0x97   :  { %v40_v12 = vpop.xlane.xlu1 %39  ;;  %v23_v13 = vpop.xlane.xlu0 %22 }
  0x98   :  { %76 = vrsqrt.f32 %v40_v12  ;;  %vm42_vm4 = vcmp.gt.f32.partialorder %v40_v12, 0.0  ;;  %vm25_vm5 = vcmp.gt.f32.partialorder %v23_v13, 0.0 }
  0x99   :  { %78 = vrsqrt.f32 %v23_v13 }
  0x9e   :  { %v73_v14 = vpop.eup %72 }
  0x9f   :  { %v75_v15 = vpop.eup %74  ;;  %v45_v16 = vsel %vm41_vm2, %v73_v14, 1.0 }
  0xa0   :  { %v28_v17 = vsel %vm24_vm3, %v75_v15, 1.0 }
  0xa1   :  { %v30_v18 = vsel %vm16_vm1, %v28_v17, 1.0 }
  0xa2   :  { %v77_v19 = vpop.eup %76  ;;  %v47_v20 = vsel %vm32_vm0, %v45_v16, %v30_v18 }
  0xa3   :  { %v79_v21 = vpop.eup %78  ;;  %v49_v22 = vmul.f32 %v47_v20, %v9_v0  ;;  %v46_v23 = vsel %vm42_vm4, %v77_v19, 1.0 }
  0xa4   :  { %v29_v24 = vsel %vm25_vm5, %v79_v21, 1.0 }
  0xa5   :  { %51 = vst [vmem:[#allocation2] sm:$0xff] %v49_v22  ;;  %v31_v25 = vsel %vm16_vm1, %v29_v24, 1.0 }
  0xa6   :  { %v48_v26 = vsel %vm32_vm0, %v46_v23, %v31_v25 }
  0xa7   :  { %v50_v27 = vmul.f32 %v48_v26, %v10_v2 }
  0xa9   :  { %52 = vst [vmem:[#allocation2 + $0x8] sm:$0xff] %v50_v27 }
  0xaa   :  { %91 = shalt.err (!%p88_p4)
}
  0xab   :  { %s92_s14 = scalar_lea.hbm %s144_s1, 256 }
  0xac   :  { %p93_p5 = scmp.ne.s32.totalorder %s144_s1, %s92_s14  ;;  %p96_p6 = scmp.lt.u32.totalorder %s92_s14, %s144_s1 }
  0xae   :  { %p98_p7 = pnand %p96_p6, %p93_p5 }
  0xb0   :  { %101 = shalt.err (!%p98_p7)
}
  0xb1   :  { %s105_s19 = smov 128   ;;  %s106_s20 = smov 8  }
  0xb2   :  { %64 = dma.vmem_to_hbm [thread:$0]  %s59_s10, 256, %s144_s1, [#allocation3], %s105_s19, %s105_s19, %s106_s20  }
  0xb3   :  { %102 = dma.done.wait [#allocation3], 256  }
  0xb4   :  { %103 = vsyncadd [#allocation3], 4294967040 }
  0xb5   :  { %68 = vsyncpa [#allocation3], 1 }

// kernel: closed_call.4
= control target key start
LH: loop header
LB: loop body
LE: loop exit
PB: predicated region body
PF: predicated region fallthrough
CT: control target
= control target key end

     0   :  { %s420_s14 = smov 0   ;;  %s542_s0 = inlined_call_operand.<no memory space> [shape: f32[1], index: 0, kind: input, shape index: {}]   ;;  %s543_s1 = inlined_call_operand.vmem [shape: f32[32,128], index: 1, kind: input, shape index: {}]   ;;  %s544_s2 = inlined_call_operand.vmem [shape: f32[6,32,128], index: 2, kind: input, shape index: {}]   ;;  %s545_s3 = inlined_call_operand.vmem [shape: f32[32,128], index: 3, kind: output, shape index: {}]  }
   0x1   :  { %8 = sst [smem:[#allocation2]] %s542_s0 }
   0x2 LB: > { %s426_s15 = sadd.s32 4294967295, %s394_s14   ;;  %p332_p0 = scmp.ge.s32.totalorder %s394_s14, 1  ;;  %s394_s14 = sphi %s420_s14, %s14_s14  }
   0x3   : > { %p133_p1 = scmp.lt.s32.totalorder %s394_s14, 7 }
   0x5   : > { %p134_p2 = pnand %p332_p0, %p133_p1 }
   0x6   : > { %p152_p3 = scmp.lt.s32.totalorder (!%p134_p2), %s426_s15, 5  ;;  %p157_p4 = scmp.eq.s32.totalorder (!%p134_p2), %s426_s15, 0 }
   0x7   : > { %137 = sbr.rel (%p134_p2) target bundleno = 220 (0xdc), region = 32  ;;  %p335_p5 = scmp.ne.s32.totalorder (!%p134_p2), %s426_s15, 0 }
   0xe   : > { %s153_s0 = scalar_select %p152_p3, %s426_s15, 5 }
   0xf   : > { %160 = sbr.rel (%p335_p5) target bundleno = 22 (0x16), region = 36  ;;  %v396_v0 = vmov (!%p335_p5), 0.0  }
  0x10   : > { %s346_s16 = sshll.u32 %s153_s0, 5  ;;  %161 = vst [vmem:[%s545_s3] sm:$0xff] (!%p335_p5), %v396_v0  ;;  %162 = vst [vmem:[%s545_s3 + $0x8] sm:$0xff] (!%p335_p5), %v396_v0 }
  0x11   : > { %s156_s19 = scalar_lea.vmem %s544_s2, %s346_s16  ;;  %163 = vst [vmem:[%s545_s3 + $0x10] sm:$0xff] (!%p335_p5), %v396_v0  ;;  %164 = vst [vmem:[%s545_s3 + $0x18] sm:$0xff] (!%p335_p5), %v396_v0 }
  0x16 PF: > { %v167_v1 = vld [vmem:[%s543_s1 + $0x10] sm:$0xff]  ;;  %v179_v3 = vlaneseq  ;;  %v165_v4 = vld [vmem:[%s543_s1] sm:$0xff]  ;;  %v168_v7 = vld [vmem:[%s543_s1 + $0x18] sm:$0xff]  ;;  %s173_s9 = sld [smem:[#allocation2]] }
  0x17   : > { %v452_v2 = vld [vmem:[%s156_s19 + $0x10] sm:$0xff]  ;;  %v458_v6 = vld [vmem:[%s156_s19] sm:$0xff]  ;;  %v463_v8 = vld [vmem:[%s156_s19 + $0x18] sm:$0xff]  ;;  %s174_s10 = scalar_select %p157_p4, 1.0, 0.0 }
  0x18   : > { %v177_v5 = vmul.f32 %v452_v2, %v167_v1  ;;  %v465_v9 = vand.u32 127, %v179_v3  ;;  %v175_v10 = vmul.f32 %v458_v6, %v165_v4  ;;  %v166_v11 = vld [vmem:[%s543_s1 + $0x8] sm:$0xff]  ;;  %v178_v13 = vmul.f32 %v463_v8, %v168_v7 }
  0x19   : > { %v471_v12 = vld [vmem:[%s156_s19 + $0x8] sm:$0xff]  ;;  %v220_v55 = vstv %s174_s10 }
  0x1a   : > { %v176_v14 = vmul.f32 %v471_v12, %v166_v11  ;;  %vm182_vm0 = vcmp.lt.s32.totalorder %v465_v9, 64  ;;  %vm234_vm1 = vcmp.ge.s32.totalorder %v465_v9, 64 }
  0x1b   : > { %v186_v15 = vsel %vm182_vm0, %v177_v5, 0.0  ;;  %v184_v16 = vsel %vm182_vm0, %v175_v10, 0.0  ;;  %v187_v17 = vsel %vm182_vm0, %v178_v13, 0.0  ;;  %v237_v20 = vsel %vm234_vm1, %v175_v10, 0.0 }
  0x1c   : > { %192 = vadd.xlane.f32.xlu1 %v186_v15  ;;  %188 = vadd.xlane.f32.xlu0 %v184_v16  ;;  %v185_v18 = vsel %vm182_vm0, %v176_v14, 0.0  ;;  %v238_v19 = vsel %vm234_vm1, %v176_v14, 0.0  ;;  %v240_v21 = vsel %vm234_vm1, %v178_v13, 0.0  ;;  %v239_v22 = vsel %vm234_vm1, %v177_v5, 0.0 }
  0x1d   : > { %v225_v60 = vstv %s173_s9 }
  0x20   : > { %194 = vadd.xlane.f32.xlu1 %v187_v17  ;;  %190 = vadd.xlane.f32.xlu0 %v185_v18  ;;  %v286_v18 = vld [vmem:[%s545_s3 + $0x8] sm:$0xff] }
  0x24   : > { %243 = vadd.xlane.f32.xlu1 %v238_v19  ;;  %241 = vadd.xlane.f32.xlu0 %v237_v20 }
  0x28   : > { %247 = vadd.xlane.f32.xlu1 %v240_v21  ;;  %245 = vadd.xlane.f32.xlu0 %v239_v22  ;;  %v285_v22 = vld [vmem:[%s545_s3] sm:$0xff] }
  0xa9   : > { %v193_v23 = vpop.xlane.xlu1 %192  ;;  %v189_v24 = vpop.xlane.xlu0 %188 }
  0xaa   : > { %v336_v25 = vmul.f32 -1.442695, %v189_v24  ;;  %v338_v26 = vmul.f32 -1.442695, %v193_v23 }
  0xac   : > { %356 = vpow2.f32 %v336_v25 }
  0xad   : > { %v195_v27 = vpop.xlane.xlu1 %194  ;;  %v191_v28 = vpop.xlane.xlu0 %190  ;;  %358 = vpow2.f32 %v338_v26 }
  0xae   : > { %v339_v29 = vmul.f32 -1.442695, %v195_v27  ;;  %v337_v30 = vmul.f32 -1.442695, %v191_v28 }
  0xb0   : > { %360 = vpow2.f32 %v339_v29 }
  0xb1   : > { %362 = vpow2.f32 %v337_v30  ;;  %v244_v31 = vpop.xlane.xlu1 %243  ;;  %v242_v32 = vpop.xlane.xlu0 %241 }
  0xb2   : > { %v341_v33 = vmul.f32 -1.442695, %v244_v31  ;;  %v340_v34 = vmul.f32 -1.442695, %v242_v32 }
  0xb4   : > { %364 = vpow2.f32 %v341_v33 }
  0xb5   : > { %366 = vpow2.f32 %v340_v34  ;;  %v248_v35 = vpop.xlane.xlu1 %247  ;;  %v246_v36 = vpop.xlane.xlu0 %245 }
  0xb6   : > { %v343_v37 = vmul.f32 -1.442695, %v248_v35  ;;  %v357_v38 = vpop.eup %356  ;;  %v342_v39 = vmul.f32 -1.442695, %v246_v36  ;;  %v287_v36 = vld [vmem:[%s545_s3 + $0x10] sm:$0xff] }
  0xb7   : > { %v208_v40 = vadd.f32 1.0, %v357_v38  ;;  %v359_v41 = vpop.eup %358 }
  0xb8   : > { %368 = vpow2.f32 %v343_v37  ;;  %v210_v45 = vadd.f32 1.0, %v359_v41 }
  0xb9   : > { %370 = vrcp.f32 %v208_v40 }
  0xba   : > { %v361_v42 = vpop.eup %360  ;;  %372 = vpow2.f32 %v342_v39 }
  0xbb   : > { %v363_v43 = vpop.eup %362  ;;  %v211_v44 = vadd.f32 1.0, %v361_v42 }
  0xbc   : > { %v209_v46 = vadd.f32 1.0, %v363_v43 }
  0xbd   : > { %374 = vrcp.f32 %v211_v44 }
  0xbe   : > { %v365_v47 = vpop.eup %364  ;;  %376 = vrcp.f32 %v209_v46 }
  0xbf   : > { %v367_v48 = vpop.eup %366  ;;  %v262_v49 = vadd.f32 1.0, %v365_v47  ;;  %378 = vrcp.f32 %v210_v45 }
  0xc0   : > { %v261_v50 = vadd.f32 1.0, %v367_v48 }
  0xc1   : > { %380 = vrcp.f32 %v262_v49 }
  0xc2   : > { %v369_v51 = vpop.eup %368  ;;  %382 = vrcp.f32 %v261_v50 }
  0xc3   : > { %v264_v52 = vadd.f32 1.0, %v369_v51  ;;  %v371_v53 = vpop.eup %370 }
  0xc4   : > { %v373_v54 = vpop.eup %372  ;;  %v221_v59 = vsub.f32 %v220_v55, %v371_v53 }
  0xc5   : > { %384 = vrcp.f32 %v264_v52  ;;  %v263_v56 = vadd.f32 1.0, %v373_v54 }
  0xc6   : > { %v226_v4 = vmul.f32 %v225_v60, %v221_v59 }
  0xc7   : > { %v375_v57 = vpop.eup %374  ;;  %386 = vrcp.f32 %v263_v56 }
  0xc8   : > { %v377_v58 = vpop.eup %376  ;;  %v224_v0 = vsub.f32 %v220_v55, %v375_v57  ;;  %v230_v17 = vsel %vm182_vm0, %v226_v4, 0.0 }
  0xc9   : > { %v222_v61 = vsub.f32 %v220_v55, %v377_v58  ;;  %v379_v62 = vpop.eup %378 }
  0xca   : > { %v223_v10 = vsub.f32 %v220_v55, %v379_v62  ;;  %v229_v14 = vmul.f32 %v225_v60, %v224_v0 }
  0xcb   : > { %v381_v63 = vpop.eup %380  ;;  %v227_v1 = vmul.f32 %v225_v60, %v222_v61 }
  0xcc   : > { %v383_v3 = vpop.eup %382  ;;  %v274_v5 = vsub.f32 %v220_v55, %v381_v63  ;;  %v228_v25 = vmul.f32 %v225_v60, %v223_v10  ;;  %v233_v28 = vsel %vm182_vm0, %v229_v14, 0.0 }
  0xcd   : > { %v273_v7 = vsub.f32 %v220_v55, %v383_v3  ;;  %v231_v15 = vsel %vm182_vm0, %v227_v1, 0.0 }
  0xce   : > { %v278_v11 = vmul.f32 %v274_v5, %v225_v60  ;;  %v232_v34 = vsel %vm182_vm0, %v228_v25, 0.0 }
  0xcf   : > { %v385_v13 = vpop.eup %384  ;;  %v277_v16 = vmul.f32 %v273_v7, %v225_v60 }
  0xd0   : > { %v282_v19 = vsel %vm234_vm1, %v278_v11, %v231_v15  ;;  %v276_v20 = vsub.f32 %v220_v55, %v385_v13 }
  0xd1   : > { %v290_v21 = vmul.f32 %v282_v19, %v471_v12  ;;  %v281_v23 = vsel %vm234_vm1, %v277_v16, %v230_v17  ;;  %v387_v24 = vpop.eup %386  ;;  %v288_v12 = vld [vmem:[%s545_s3 + $0x18] sm:$0xff] }
  0xd2   : > { %v289_v26 = vmul.f32 %v281_v23, %v458_v6  ;;  %v280_v27 = vmul.f32 %v276_v20, %v225_v60  ;;  %v275_v30 = vsub.f32 %v220_v55, %v387_v24 }
  0xd3   : > { %v294_v29 = vadd.f32 %v290_v21, %v286_v18 }
  0xd4   : > { %v293_v31 = vadd.f32 %v289_v26, %v285_v22  ;;  %v284_v32 = vsel %vm234_vm1, %v280_v27, %v233_v28  ;;  %v279_v33 = vmul.f32 %v275_v30, %v225_v60 }
  0xd5   : > { %298 = vst [vmem:[%s545_s3 + $0x8] sm:$0xff] %v294_v29  ;;  %v292_v6 = vmul.f32 %v284_v32, %v463_v8 }
  0xd6   : > { %297 = vst [vmem:[%s545_s3] sm:$0xff] %v293_v31  ;;  %v283_v37 = vsel %vm234_vm1, %v279_v33, %v232_v34 }
  0xd7   : > { %v296_v35 = vadd.f32 %v292_v6, %v288_v12  ;;  %v291_v38 = vmul.f32 %v283_v37, %v452_v2 }
  0xd9   : > { %300 = vst [vmem:[%s545_s3 + $0x18] sm:$0xff] %v296_v35  ;;  %v295_v8 = vadd.f32 %v291_v38, %v287_v36 }
  0xdb   : > { %299 = vst [vmem:[%s545_s3 + $0x10] sm:$0xff] %v295_v8 }
  0xdc PF: > { %s14_s14 = sadd.s32 1, %s394_s14  }
  0xdd   : > { %p11_p6 = scmp.ge.s32.totalorder %s14_s14, 8  }
  0xdf   :  { %13 = sbr.rel (!%p11_p6) target bundleno = 2 (0x2), region = 62 }

</bundles_post_ra>
